<compile_context>
chip_gen: v5e
topology: v5e:2x2
jax: 0.10.0
libtpu: 0.0.40
codegen_flags: <defaults>
</compile_context>

<pallas_src>
import jax
import jax.numpy as jnp
from jax.experimental import pallas as pl
from jax.experimental.pallas import tpu as pltpu

# ---- synthetic config (data_dim is a free global in the original script) ----
DATA_DIM = 17            # => input feature dim = data_dim - 1 = 16
IN_DIM = DATA_DIM - 1
H1, H2, OUT = 32, 8, 1


def mlp_kernel(xT_ref, w1_ref, b1_ref, w2_ref, b2_ref, w3_ref, b3_ref, o_ref):
    # xT_ref: [IN_DIM, TB] bf16 (batch on lanes)
    xT = xT_ref[...]

    # Layer 1: [H1, IN_DIM] @ [IN_DIM, TB] -> [H1, TB], f32 accumulate on MXU.
    h1 = jnp.dot(w1_ref[...], xT, preferred_element_type=jnp.float32)
    h1 = jnp.maximum(h1 + b1_ref[...], 0.0)                 # bias + ReLU in f32

    # Layer 2: [H2, H1] @ [H1, TB] -> [H2, TB]; feed bf16 into the MXU.
    h2 = jnp.dot(w2_ref[...], h1.astype(w2_ref.dtype),
                 preferred_element_type=jnp.float32)
    h2 = jnp.maximum(h2 + b2_ref[...], 0.0)

    # Layer 3 (out_features=1): VPU multiply + sublane reduce instead of an
    # MXU pass that would produce a single useful lane.
    y = jnp.sum(h2 * w3_ref[...], axis=0, keepdims=True) + b3_ref[...]  # [1, TB]

    o_ref[...] = y.astype(o_ref.dtype)                       # lane-dense store


def dnn_forward(x, params, *, tb=512):
    """x: [B, IN_DIM] float32 -> [B, 1] float32.

    tb: batch tile (lanes per grid step); must be a multiple of 128.
    With the batch-on-lanes layout a tile costs only IN_DIM*tb*2 bytes of VMEM
    (bf16, double-buffered), so tb up to a few thousand fits every generation
    (including v7x's 64 MiB VMEM / 32 MiB scoped default) with huge headroom.
    """
    assert tb % 128 == 0 and tb >= 128, "tb must be a positive multiple of 128"
    w1, b1, w2, b2, w3, b3 = params
    B = x.shape[0]
    grid_b = pl.cdiv(B, tb)
    Bp = grid_b * tb

    # Layout plumbing in the wrapper: bf16 cast + transpose + pad to tile multiple.
    xT = x.astype(jnp.bfloat16).T                       # [IN_DIM, B]
    if Bp != B:
        xT = jnp.pad(xT, ((0, 0), (0, Bp - B)))         # zero-pad extra columns

    flops = 2 * Bp * (IN_DIM * H1 + H1 * H2 + H2)
    bytes_accessed = int(
        Bp * IN_DIM * 2            # bf16 input
        + Bp * OUT * 4             # f32 output
        + (w1.size + w2.size) * 2  # bf16 weights (resident, fetched once)
        + (b1.size + b2.size + w3.size + b3.size) * 4)

    out = pl.pallas_call(
        mlp_kernel,
        out_shape=jax.ShapeDtypeStruct((1, Bp), jnp.float32),
        grid=(grid_b,),
        in_specs=[
            # batch-tiled input: new [IN_DIM, tb] block per grid step
            pl.BlockSpec((IN_DIM, tb), lambda i: (0, i)),
            # weights / biases: constant block index -> DMA'd once, VMEM-resident
            pl.BlockSpec(w1.shape, lambda i: (0, 0)),
            pl.BlockSpec(b1.shape, lambda i: (0, 0)),
            pl.BlockSpec(w2.shape, lambda i: (0, 0)),
            pl.BlockSpec(b2.shape, lambda i: (0, 0)),
            pl.BlockSpec(w3.shape, lambda i: (0, 0)),
            pl.BlockSpec(b3.shape, lambda i: (0, 0)),
        ],
        out_specs=pl.BlockSpec((1, tb), lambda i: (0, i)),   # lane-dense output
        compiler_params=pltpu.CompilerParams(
            dimension_semantics=("parallel",)),              # megacore on v7x
        cost_estimate=pl.CostEstimate(
            flops=flops, transcendentals=0, bytes_accessed=bytes_accessed),
    )(xT, w1, b1, w2, b2, w3, b3)

    # [1, Bp] -> [B, 1]
    return out[0, :B].reshape(B, 1)


def init_params(key):
    """Deterministic init mimicking nn.Linear default (U(-1/sqrt(fan_in), +)).

    Weights are stored PyTorch-style [out, in]; the two MXU weights are bf16,
    biases and the final (VPU) weight column stay f32.
    """
    ks = jax.random.split(key, 6)

    def linear(kw, kb, fan_in, fan_out):
        bound = fan_in ** -0.5
        w = jax.random.uniform(kw, (fan_out, fan_in), jnp.float32, -bound, bound)
        b = jax.random.uniform(kb, (fan_out, 1), jnp.float32, -bound, bound)
        return w, b

    w1, b1 = linear(ks[0], ks[1], IN_DIM, H1)     # [32, 16], [32, 1]
    w2, b2 = linear(ks[2], ks[3], H1, H2)         # [8, 32],  [8, 1]
    w3, b3 = linear(ks[4], ks[5], H2, OUT)        # [1, 8],   [1, 1]
    return (w1.astype(jnp.bfloat16), b1,
            w2.astype(jnp.bfloat16), b2,
            w3.T,                                  # [8, 1] column for the VPU reduce
            b3)


def dnn_reference(x, params):
    """Pure-JAX reference following the same numeric path (bf16 in, f32 acc)."""
    w1, b1, w2, b2, w3, b3 = params
    xb = x.astype(jnp.bfloat16)
    h1 = jnp.maximum(
        jnp.dot(xb, w1.T, preferred_element_type=jnp.float32) + b1.T, 0.0)
    h2 = jnp.maximum(
        jnp.dot(h1.astype(jnp.bfloat16), w2.T,
                preferred_element_type=jnp.float32) + b2.T, 0.0)
    return jnp.sum(h2 * w3.T, axis=-1, keepdims=True) + b3[0, 0]


if __name__ == "__main__":
    key = jax.random.PRNGKey(0)
    kx, kp = jax.random.split(key)

    B = 1000                                  # not a tile multiple: exercises padding
    x = jax.random.normal(kx, (B, IN_DIM), jnp.float32)
    params = init_params(kp)

    y = dnn_forward(x, params, tb=256)        # grid=(4,) batch tiles
    y = jax.block_until_ready(y)

    y_ref = dnn_reference(x, params)
    assert y.shape == (B, OUT), y.shape
    assert jnp.allclose(y, y_ref, atol=1e-2, rtol=1e-2), "mismatch vs reference"

    print("KERNEL_OK")
</pallas_src>

<mosaic_0001>
module attributes {stable_mosaic.version = 11 : i64} {
  func.func @mlp_kernel(%arg0: i32, %arg1: memref<16x256xbf16, #tpu.memory_space<vmem>>, %arg2: memref<32x16xbf16, #tpu.memory_space<vmem>>, %arg3: memref<32x1xf32, #tpu.memory_space<vmem>>, %arg4: memref<8x32xbf16, #tpu.memory_space<vmem>>, %arg5: memref<8x1xf32, #tpu.memory_space<vmem>>, %arg6: memref<8x1xf32, #tpu.memory_space<vmem>>, %arg7: memref<1x1xf32, #tpu.memory_space<vmem>>, %arg8: memref<1x256xf32, #tpu.memory_space<vmem>>) attributes {dimension_semantics = [#tpu.dimension_semantics<parallel>], iteration_bounds = array<i64: 4>, scalar_prefetch = 0 : i64, scratch_operands = 0 : i64, tpu.core_type = #tpu.core_type<tc>, window_params = [{transform_indices = @transform_0, window_bounds = array<i64: 16, 256>}, {pipeline_mode = #tpu.pipeline_mode<synchronous>, transform_indices = @transform_1, window_bounds = array<i64: 32, 16>}, {pipeline_mode = #tpu.pipeline_mode<synchronous>, transform_indices = @transform_2, window_bounds = array<i64: 32, 1>}, {pipeline_mode = #tpu.pipeline_mode<synchronous>, transform_indices = @transform_3, window_bounds = array<i64: 8, 32>}, {pipeline_mode = #tpu.pipeline_mode<synchronous>, transform_indices = @transform_4, window_bounds = array<i64: 8, 1>}, {pipeline_mode = #tpu.pipeline_mode<synchronous>, transform_indices = @transform_5, window_bounds = array<i64: 8, 1>}, {pipeline_mode = #tpu.pipeline_mode<synchronous>, transform_indices = @transform_6, window_bounds = array<i64: 1, 1>}, {transform_indices = @transform_7, window_bounds = array<i64: 1, 256>}]} {
    %c0 = arith.constant 0 : index
    %c0_0 = arith.constant 0 : index
    %0 = vector.load %arg1[%c0, %c0_0] : memref<16x256xbf16, #tpu.memory_space<vmem>>, vector<16x256xbf16>
    %c0_1 = arith.constant 0 : index
    %c0_2 = arith.constant 0 : index
    %1 = vector.load %arg2[%c0_1, %c0_2] : memref<32x16xbf16, #tpu.memory_space<vmem>>, vector<32x16xbf16>
    %cst = arith.constant dense<0.000000e+00> : vector<32x256xf32>
    %2 = tpu.matmul %1, %0, %cst {dimension_numbers = #tpu.dot_dimension_numbers<[1], [0], [0], [1], [0, 0, 1, 1], [], []>} : vector<32x16xbf16>, vector<16x256xbf16>, vector<32x256xf32> -> vector<32x256xf32>
    %c0_3 = arith.constant 0 : index
    %c0_4 = arith.constant 0 : index
    %3 = vector.load %arg3[%c0_3, %c0_4] : memref<32x1xf32, #tpu.memory_space<vmem>>, vector<32x1xf32>
    %4 = vector.broadcast %3 : vector<32x1xf32> to vector<32x256xf32>
    %5 = arith.addf %2, %4 : vector<32x256xf32>
    %cst_5 = arith.constant 0.000000e+00 : f32
    %6 = vector.broadcast %cst_5 : f32 to vector<32x256xf32>
    %7 = arith.maximumf %5, %6 : vector<32x256xf32>
    %c0_6 = arith.constant 0 : index
    %c0_7 = arith.constant 0 : index
    %8 = vector.load %arg4[%c0_6, %c0_7] : memref<8x32xbf16, #tpu.memory_space<vmem>>, vector<8x32xbf16>
    %9 = arith.truncf %7 : vector<32x256xf32> to vector<32x256xbf16>
    %cst_8 = arith.constant dense<0.000000e+00> : vector<8x256xf32>
    %10 = tpu.matmul %8, %9, %cst_8 {dimension_numbers = #tpu.dot_dimension_numbers<[1], [0], [0], [1], [0, 0, 1, 1], [], []>} : vector<8x32xbf16>, vector<32x256xbf16>, vector<8x256xf32> -> vector<8x256xf32>
    %c0_9 = arith.constant 0 : index
    %c0_10 = arith.constant 0 : index
    %11 = vector.load %arg5[%c0_9, %c0_10] : memref<8x1xf32, #tpu.memory_space<vmem>>, vector<8x1xf32>
    %12 = vector.broadcast %11 : vector<8x1xf32> to vector<8x256xf32>
    %13 = arith.addf %10, %12 : vector<8x256xf32>
    %cst_11 = arith.constant 0.000000e+00 : f32
    %14 = vector.broadcast %cst_11 : f32 to vector<8x256xf32>
    %15 = arith.maximumf %13, %14 : vector<8x256xf32>
    %c0_12 = arith.constant 0 : index
    %c0_13 = arith.constant 0 : index
    %16 = vector.load %arg6[%c0_12, %c0_13] : memref<8x1xf32, #tpu.memory_space<vmem>>, vector<8x1xf32>
    %17 = vector.broadcast %16 : vector<8x1xf32> to vector<8x256xf32>
    %18 = arith.mulf %15, %17 : vector<8x256xf32>
    %cst_14 = arith.constant dense<0.000000e+00> : vector<256xf32>
    %19 = vector.multi_reduction <add>, %18, %cst_14 [0] : vector<8x256xf32> to vector<256xf32>
    %20 = vector.shape_cast %19 : vector<256xf32> to vector<1x256xf32>
    %c0_15 = arith.constant 0 : index
    %c0_16 = arith.constant 0 : index
    %21 = vector.load %arg7[%c0_15, %c0_16] : memref<1x1xf32, #tpu.memory_space<vmem>>, vector<1x1xf32>
    %22 = vector.broadcast %21 : vector<1x1xf32> to vector<1x256xf32>
    %23 = arith.addf %20, %22 : vector<1x256xf32>
    %c0_17 = arith.constant 0 : index
    %c0_18 = arith.constant 0 : index
    %24 = vector.load %arg8[%c0_17, %c0_18] : memref<1x256xf32, #tpu.memory_space<vmem>>, vector<1x256xf32>
    tpu.vector_store %arg8[%c0_17, %c0_18], %23 {strides = array<i32>} : memref<1x256xf32, #tpu.memory_space<vmem>>, vector<1x256xf32>,
    return
  }
  func.func @transform_0(%arg0: i32) -> (i32, i32) {
    %c0_i32 = arith.constant 0 : i32
    %c0_i32_0 = arith.constant 0 : i32
    return %c0_i32, %arg0 : i32, i32
  }
  func.func @transform_1(%arg0: i32) -> (i32, i32) {
    %c0_i32 = arith.constant 0 : i32
    %c0_i32_0 = arith.constant 0 : i32
    %c0_i32_1 = arith.constant 0 : i32
    return %c0_i32, %c0_i32_0 : i32, i32
  }
  func.func @transform_2(%arg0: i32) -> (i32, i32) {
    %c0_i32 = arith.constant 0 : i32
    %c0_i32_0 = arith.constant 0 : i32
    %c0_i32_1 = arith.constant 0 : i32
    return %c0_i32, %c0_i32_0 : i32, i32
  }
  func.func @transform_3(%arg0: i32) -> (i32, i32) {
    %c0_i32 = arith.constant 0 : i32
    %c0_i32_0 = arith.constant 0 : i32
    %c0_i32_1 = arith.constant 0 : i32
    return %c0_i32, %c0_i32_0 : i32, i32
  }
  func.func @transform_4(%arg0: i32) -> (i32, i32) {
    %c0_i32 = arith.constant 0 : i32
    %c0_i32_0 = arith.constant 0 : i32
    %c0_i32_1 = arith.constant 0 : i32
    return %c0_i32, %c0_i32_0 : i32, i32
  }
  func.func @transform_5(%arg0: i32) -> (i32, i32) {
    %c0_i32 = arith.constant 0 : i32
    %c0_i32_0 = arith.constant 0 : i32
    %c0_i32_1 = arith.constant 0 : i32
    return %c0_i32, %c0_i32_0 : i32, i32
  }
  func.func @transform_6(%arg0: i32) -> (i32, i32) {
    %c0_i32 = arith.constant 0 : i32
    %c0_i32_0 = arith.constant 0 : i32
    %c0_i32_1 = arith.constant 0 : i32
    return %c0_i32, %c0_i32_0 : i32, i32
  }
  func.func @transform_7(%arg0: i32) -> (i32, i32) {
    %c0_i32 = arith.constant 0 : i32
    %c0_i32_0 = arith.constant 0 : i32
    return %c0_i32, %arg0 : i32, i32
  }
}

</mosaic_0001>

<bundles_post_ra>
// kernel: tpu_custom_call.1
= control target key start
LH: loop header
LB: loop body
LE: loop exit
PB: predicated region body
PF: predicated region fallthrough
CT: control target
= control target key end

     0   :  { %s899_s0 = inlined_call_operand.vmem [shape: bf16[16,1024], index: 0, kind: input, shape index: {}]   ;;  %s900_s1 = inlined_call_operand.vmem [shape: bf16[32,16], index: 1, kind: input, shape index: {}]   ;;  %s901_s2 = inlined_call_operand.vmem [shape: f32[32,1], index: 2, kind: input, shape index: {}]   ;;  %s902_s3 = inlined_call_operand.vmem [shape: bf16[8,32], index: 3, kind: input, shape index: {}]   ;;  %s903_s4 = inlined_call_operand.vmem [shape: f32[8,1], index: 4, kind: input, shape index: {}]   ;;  %s904_s5 = inlined_call_operand.vmem [shape: f32[8,1], index: 5, kind: input, shape index: {}]   ;;  %s905_s6 = inlined_call_operand.<no memory space> [shape: f32[1,1], index: 6, kind: input, shape index: {}]   ;;  %s906_s7 = inlined_call_operand.hbm [shape: f32[1,1024], index: 7, kind: output, shape index: {}]  }
   0x1   :  { %v12_v0 = vstv %s905_s6 }
   0x2   :  { %13 = vst [vmem:[#allocation2] sm:$0x1] %v12_v0 }
   0x3   :  { %14 = vsyncpa [#allocation5], 0 }
   0x4   :  { %16 = vsyncpa [#allocation5 + $0x1], 0  ;;  %s780_s26 = smov 0   ;;  %s782_s27 = smov 0  }
   0x5   :  { %s784_s28 = smov 0   ;;  %s786_s29 = smov 0  }
   0x6 LB: > { %s588_s6 = sadd.s32 4294967295, %s734_s29   ;;  %s589_s30 = sadd.s32 4294967294, %s734_s29   ;;  %s734_s29 = sphi %s786_s29, %s912_s29   ;;  %s730_s28 = sphi %s784_s28, %s911_s28   ;;  %s726_s27 = sphi %s782_s27, %s910_s27   ;;  %s722_s26 = sphi %s780_s26, %s909_s26  }
   0x7   : > { %s803_s8 = sadd.s32 1, %s734_s29   ;;  %s29_s9 = sadd.s32 1, %s730_s28 }
   0x8   : > { %s26_s10 = ssub.s32 %s734_s29, %s803_s8  ;;  %p36_p0 = scmp.ne.s32.totalorder %s730_s28, %s726_s27 }
   0x9   : > { %p27_p1 = scmp.eq.s32.totalorder %s26_s10, 0  ;;  %p37_p2 = scmp.eq.s32.totalorder %s734_s29, 0 }
   0xa   : > { %p192_p3 = scmp.eq.s32.totalorder %s588_s6, 3  ;;  %p197_p4 = scmp.ne.s32.totalorder %s726_s27, %s722_s26 }
   0xb   : > { %s816_s11 = scalar_select %p27_p1, %s730_s28, %s29_s9  }
   0xc   : > { %p38_p5 = por %p37_p2, %p36_p0  ;;  %p818_p6 = por %p192_p3, %p36_p0 }
   0xd   : > { %p198_p7 = scmp.eq.s32.totalorder %s589_s30, 3  ;;  %p591_p9 = scmp.ge.s32.totalorder %s734_s29, 4 }
   0xf   : > { %p822_p8 = por %p198_p7, %p197_p4  ;;  %232 = sbr.rel (%p591_p9) target bundleno = 26 (0x1a), region = 40 }
  0x14   : > { %235 = sbr.rel (!%p38_p5) target bundleno = 26 (0x1a), region = 44  ;;  %s237_s14 = sand.u32 (%p38_p5), 1, %s730_s28  }
  0x15   : > { %s624_s15 = sshll.u32 (%p38_p5), %s734_s29, 3  ;;  %s592_s16 = sshll.u32 (%p38_p5), %s237_s14, 4 }
  0x16   : > { %s242_s19 = scalar_lea.vmem (%p38_p5), %s899_s0, %s624_s15  ;;  %s239_s20 = scalar_lea.vmem (%p38_p5), [#allocation3], %s592_s16 }
  0x17   : > { %v273_v1 = vld [vmem:[%s242_s19] sm:$0xff] (%p38_p5) }
  0x18   : > { %v275_v2 = vld [vmem:[%s242_s19 + $0x20] sm:$0xff] (%p38_p5)  ;;  %274 = vst [vmem:[%s239_s20] sm:$0xff] (%p38_p5), %v273_v1 }
  0x19   : > { %276 = vst [vmem:[%s239_s20 + $0x8] sm:$0xff] %v275_v2 }
  0x1a PF: > { %p595_p10 = scmp.ge.s32.totalorder %s734_s29, 1  ;;  %p281_p11 = scmp.lt.s32.totalorder %s734_s29, 5 }
  0x1c   : > { %p282_p12 = pnand %p595_p10, %p281_p11 }
  0x1d   : > { %s835_s21 = sand.u32 (!%p282_p12), 1, %s726_s27   ;;  %s621_s14 = sshll.u32 (!%p282_p12), %s588_s6, 1 }
  0x1e   : > { %285 = sbr.rel (%p282_p12) target bundleno = 363 (0x16b), region = 82  ;;  %s596_s30 = sshll.u32 (!%p282_p12), %s835_s21, 4 }
  0x1f   : > { %s290_s9 = scalar_lea.vmem (!%p282_p12), [#allocation3], %s596_s30  ;;  %s597_s10 = sshll.u32 (!%p282_p12), %s835_s21, 1 }
  0x20   : > { %s519_s17 = scalar_lea.hbm (!%p282_p12), %s906_s7, %s621_s14  ;;  %s318_s18 = scalar_lea.vmem (!%p282_p12), [#allocation4], %s597_s10 }
  0x21   : > { %s521_s19 = sshll.u32 (!%p282_p12), %s318_s18, 4  ;;  %s523_s20 = sshll.u32 (!%p282_p12), %s519_s17, 4  ;;  %s522_s19 = int_to_ptr.vmem [resolvable:$true] %s521_s19  ;;  %s524_s20 = int_to_ptr.hbm [resolvable:$true] %s523_s20 }
  0x22   : > { %s509_s6 = scalar_lea.sflag (!%p282_p12), [#allocation5], %s835_s21  ;;  %s686_s22 = sshra.s32 (!%p282_p12), %s524_s20, 4  ;;  %s687_s22 = int_to_ptr.hbm [resolvable:$true] %s686_s22 }
  0x23   : > { %v330_v3 = vld [vmem:[%s901_s2 + $0x10] sm:$0xff]  ;;  %v328_v4 = vld [vmem:[%s901_s2] sm:$0xff]  ;;  %v736_v5 = vmov 0   ;;  %v626_v7 = vld [vmem:[%s290_s9 + $0x4] sm:$0xf0]  ;;  %vm372_vm0 = vcmask 130048   ;;  %p693_p2 = scmp.lt.s32.totalorder %s687_s22, %s906_s7 }
  0x24   : > { %670 = vset.pattern.permute.xlu1 %v736_v5  ;;  %669 = vset.pattern.permute.xlu0 %v736_v5  ;;  %v608_v6 = vld [vmem:[%s290_s9] sm:$0xf]  ;;  %v625_v8 = vld [vmem:[%s290_s9 + $0x4] sm:$0xf]  ;;  %v610_v10 = vld [vmem:[%s290_s9 + $0x8] sm:$0xf0] }
  0x25   : > { %344 = vperm.xlu0 %669, %v330_v3   ;;  %334 = vperm.xlu1 %670, %v328_v4   ;;  %v609_v9 = vor.u32 %v626_v7, %v608_v6  ;;  %v613_v11 = vor.u32 %v625_v8, %v610_v10  ;;  %v627_v12 = vld [vmem:[%s900_s1] sm:$0xff]  ;;  %v331_v13 = vld [vmem:[%s901_s2 + $0x18] sm:$0xff]  ;;  %v329_v14 = vld [vmem:[%s901_s2 + $0x8] sm:$0xff]  ;;  %vm436_vm1 = vcmask 261120   ;;  %vm500_vm2 = vcmask 1040384   ;;  %s688_s23 = scalar_lea.hbm %s687_s22, 2 }
  0x26   : > { %671 = vset.pattern.permute.xlu2 %v736_v5  ;;  %v488_v15 = vld [vmem:[#allocation2] sm:$0x1]  ;;  %v628_v16 = vld [vmem:[%s900_s1 + $0x8] sm:$0xff]  ;;  %p689_p13 = scmp.ne.s32.totalorder %s687_s22, %s688_s23  ;;  %s692_s30 = scalar_lea.hbm %s906_s7, 8 }
  0x27   : > { %386 = vmatpush.bf16.msra.mxu0 %v609_v9  ;;  %405 = vmatpush.bf16.msra.mxu1 %v613_v11  ;;  %v430_v19 = vld [vmem:[%s903_s4] sm:$0xff]  ;;  %p694_p3 = scmp.lt.s32.totalorder %s692_s30, %s688_s23 }
  0x28   : > { %433 = vperm.xlu2 %671, %v430_v19   ;;  %v468_v23 = vld [vmem:[%s904_s5] sm:$0xff]  ;;  %p690_p0 = pnand %p689_p13, %p818_p6 }
  0x29   : > { %v425_v51 = vld [vmem:[%s902_s3] sm:$0xf]  ;;  %p695_p4 = por %p694_p3, %p693_p2 }
  0x2a   : > { %614 = vmatmul.msk.bf16.vlgmr.msra.gmra.mxu0 %vm372_vm0, %v627_v12  ;;  %616 = vmatmul.msk.bf16.vlgmr.msra.gmra.mxu1 %vm372_vm0, %v627_v12  ;;  %p691_p1 = pneg %p690_p0 }
  0x2c   : > { %p696_p5 = pnand %p695_p4, %p691_p1 }
  0x2d   : > { %349 = vperm.xlu0 %669, %v331_v13   ;;  %339 = vperm.xlu1 %670, %v329_v14   ;;  %v503_v14 = vlaneseq }
  0x2f   : > { %vm505_vm3 = vcmp.lt.s32.totalorder %v503_v14, 256 }
  0x30   : > { %471 = vperm.xlu2 %671, %v468_v23  }
  0x35   : > { %491 = vperm.xlu0 %669, %v488_v15  }
  0x3a   : > { %615 = vmatmul.msk.bf16.gmra.mxu0 %vm372_vm0, %v628_v16  ;;  %617 = vmatmul.msk.bf16.gmra.mxu1 %vm372_vm0, %v628_v16 }
  0x82   : > { %v434_v52 = vpop.permute.xlu2 %433 }
  0x8a   : > { %v472_v58 = vpop.permute.xlu2 %471 }
  0x97   : > { %v335_v22 = vpop.permute.xlu1 %334  ;;  %v345_v24 = vpop.permute.xlu0 %344 }
  0x9f   : > { %v340_v27 = vpop.permute.xlu1 %339  ;;  %v350_v29 = vpop.permute.xlu0 %349 }
  0xa7   : > { %v388_v17 = vpop.f32.mrf.mxu0  ;;  %v407_v18 = vpop.f32.mrf.mxu1 }
  0xa8   : > { %v389_v37 = vadd.f32 %v388_v17, %v335_v22  ;;  %v408_v40 = vadd.f32 %v407_v18, %v335_v22  ;;  %v492_v8 = vpop.permute.xlu0 %491 }
  0xa9   : > { %v494_v11 = vperm.slane %v492_v8, 0 }
  0xaa   : > { %v417_v47 = vmax.f32 %v389_v37, 0.0  ;;  %v418_v48 = vmax.f32 %v408_v40, 0.0 }
  0xaf   : > { %v390_v20 = vpop.f32.mrf.mxu0  ;;  %v409_v21 = vpop.f32.mrf.mxu1 }
  0xb0   : > { %v391_v32 = vadd.f32 %v390_v20, %v340_v27  ;;  %v410_v35 = vadd.f32 %v409_v21, %v340_v27 }
  0xb2   : > { %v419_v43 = vmax.f32 %v391_v32, 0.0  ;;  %v420_v45 = vmax.f32 %v410_v35, 0.0 }
  0xb4   : > { %v426_v49 = vpack.c.bf16 %v419_v43, %v417_v47  ;;  %v427_v50 = vpack.c.bf16 %v420_v45, %v418_v48 }
  0xb7   : > { %v393_v25 = vpop.f32.mrf.mxu0  ;;  %v412_v26 = vpop.f32.mrf.mxu1 }
  0xb8   : > { %v394_v28 = vadd.f32 %v393_v25, %v345_v24  ;;  %v413_v30 = vadd.f32 %v412_v26, %v345_v24 }
  0xba   : > { %v421_v38 = vmax.f32 %v394_v28, 0.0  ;;  %v422_v41 = vmax.f32 %v413_v30, 0.0 }
  0xbf   : > { %v395_v31 = vpop.f32.mrf.mxu0  ;;  %v414_v34 = vpop.f32.mrf.mxu1 }
  0xc0   : > { %v396_v33 = vadd.f32 %v395_v31, %v350_v29  ;;  %v415_v36 = vadd.f32 %v414_v34, %v350_v29 }
  0xc2   : > { %v423_v39 = vmax.f32 %v396_v33, 0.0  ;;  %v424_v42 = vmax.f32 %v415_v36, 0.0 }
  0xc4   : > { %v428_v44 = vpack.c.bf16 %v423_v39, %v421_v38  ;;  %v429_v46 = vpack.c.bf16 %v424_v42, %v422_v41 }
  0xc6   : > { %446 = vmatpush.bf16.msra.mxu2 %v428_v44  ;;  %459 = vmatpush.bf16.msra.mxu3 %v429_v46 }
  0xca   : > { %447 = vmatpush.bf16.msra.mxu2 %v426_v49  ;;  %460 = vmatpush.bf16.msra.mxu3 %v427_v50 }
  0xcd   : > { %618 = vmatmul.msk.bf16.vlgmr.msra.gmra.mxu2 %vm436_vm1, %v425_v51  ;;  %619 = vmatmul.msk.bf16.vlgmr.msra.gmra.mxu3 %vm436_vm1, %v425_v51 }
 0x150   : > { %v449_v53 = vpop.f32.mrf.mxu2  ;;  %v462_v55 = vpop.f32.mrf.mxu3 }
 0x151   : > { %v450_v54 = vadd.f32 %v449_v53, %v434_v52  ;;  %v463_v56 = vadd.f32 %v462_v55, %v434_v52 }
 0x153   : > { %v466_v57 = vmax.f32 %v450_v54, 0.0  ;;  %v467_v59 = vmax.f32 %v463_v56, 0.0 }
 0x155   : > { %v474_v60 = vmul.f32 %v472_v58, %v466_v57  ;;  %v475_v61 = vmul.f32 %v472_v58, %v467_v59 }
 0x157   : > { %v476_v62 = vrot.slane %v474_v60, 4  ;;  %v482_v63 = vrot.slane %v475_v61, 4 }
 0x158   : > { %v451_v0 = vpop.f32.mrf.mxu2  ;;  %v464_v2 = vpop.f32.mrf.mxu3 }
 0x159   : > { %v477_v1 = vadd.f32 %v476_v62, %v474_v60  ;;  %v483_v3 = vadd.f32 %v482_v63, %v475_v61 }
 0x15b   : > { %v478_v4 = vrot.slane %v477_v1, 2  ;;  %v484_v5 = vrot.slane %v483_v3, 2 }
 0x15d   : > { %v479_v6 = vadd.f32 %v478_v4, %v477_v1  ;;  %v485_v7 = vadd.f32 %v484_v5, %v483_v3 }
 0x15f   : > { %v480_v9 = vrot.slane %v479_v6, 1  ;;  %v486_v10 = vrot.slane %v485_v7, 1 }
 0x161   : > { %v481_v12 = vadd.f32 %v480_v9, %v479_v6  ;;  %v487_v13 = vadd.f32 %v486_v10, %v485_v7 }
 0x163   : > { %v496_v15 = vadd.f32 %v494_v11, %v487_v13  ;;  %v495_v16 = vadd.f32 %v494_v11, %v481_v12 }
 0x165   : > { %v499_v17 = vrot.slane %v496_v15, 7 }
 0x167   : > { %v501_v18 = vsel %vm500_vm2, %v495_v16, %v499_v17 }
 0x168   : > { %507 = vst.msk [vmem:[%s318_s18] sm:$0x3] %vm505_vm3, %v501_v18 }
 0x169   : > { %699 = shalt.err (!%p696_p5)
}
 0x16a   : > { %629 = dma.vmem_to_hbm [thread:$0]  (%p818_p6), %s522_s19, 32, %s524_s20, %s509_s6  }
 0x16b PF: > { %p635_p7 = scmp.ge.s32.totalorder %s734_s29, 2  ;;  %s535_s21 = sand.u32 1, %s722_s26  }
 0x16c   : > { %s536_s14 = scalar_lea.sflag [#allocation5], %s535_s21 }
 0x16d   : > { %p632_p9 = pnand %p635_p7, %p822_p8 }
 0x16f   : > { %p633_p10 = pneg %p632_p9 }
 0x171   : > { %717 = dma.done.wait (%p633_p10), %s536_s14, 32  }
 0x172   : > { %719 = vsyncadd (%p633_p10), %s536_s14, 4294967264  ;;  %p19_p11 = scmp.ge.s32.totalorder %s803_s8, 6   ;;  %s909_s26 = smov %s726_s27 }
 0x173   : > { %s910_s27 = smov %s730_s28  ;;  %s911_s28 = smov %s816_s11 }
 0x174   : > { %s912_s29 = smov %s803_s8  ;;  %21 = sbr.rel (!%p19_p11) target bundleno = 6 (0x6), region = 126 }
 0x179   :  { %542 = vsyncpa [#allocation5], 1 }
 0x17a   :  { %544 = vsyncpa [#allocation5 + $0x1], 1 }

</bundles_post_ra>
